<compile_context>
chip_gen: v6e
topology: v6e:2x2x1
jax: 0.10.0
libtpu: 0.0.40
codegen_flags: <defaults>
</compile_context>

<pallas_src>
import functools

import jax
import jax.numpy as jnp
from jax.experimental import pallas as pl
from jax.experimental.pallas import tpu as pltpu

LANE = 128  # lane-dense padded feature width


def _round_up(x, m):
    return ((x + m - 1) // m) * m


def _actor_kernel(x_ref, p_ref, out_ref, *, maxaction, s_pad, h1, h2):
    # Static section offsets inside the packed parameter buffer (all multiples
    # of 8, so every ref slice is sublane-aligned and is a zero-cost view).
    r1 = s_pad                # W2 rows start
    r2 = s_pad + h1           # W3 rows start
    r3 = s_pad + h1 + h2      # bias block start (8 rows; rows 0..2 are b1..b3)

    w1 = p_ref[0:r1, :]       # [S_pad, 128]
    w2 = p_ref[r1:r2, :]      # [H1,    128]
    w3 = p_ref[r2:r3, :]      # [H2,    128]
    bias = p_ref[r3:r3 + 8, :]  # [8, 128] single aligned load; slice as values
    b1 = bias[0:1, :]
    b2 = bias[1:2, :]
    b3 = bias[2:3, :]

    x = x_ref[...]            # [TB, S_pad]

    # Layer 1: [TB, S_pad] @ [S_pad, 128] -> [TB, 128] (padded lanes stay 0).
    h = jnp.maximum(
        jnp.dot(x, w1, preferred_element_type=jnp.float32) + b1, 0.0)

    # Layer 2: K shrunk to H1 (MXU zero-pads K internally; lanes >= H1 of h
    # are exactly 0, so the static lane slice is lossless).
    h = jnp.maximum(
        jnp.dot(h[:, :h1], w2, preferred_element_type=jnp.float32) + b2, 0.0)

    # Output head + tanh (EUP) + action scaling; lane-dense [TB, 128] store.
    a = jnp.tanh(
        jnp.dot(h[:, :h2], w3, preferred_element_type=jnp.float32) + b3)
    out_ref[...] = (a * maxaction).astype(out_ref.dtype)


def pack_params(logical_params):
    """Pack logical ([in, out]-layout) weights/biases into ONE padded buffer.

    Row layout (all section starts are multiples of 8):
      [0,        S_pad)         W1  (cols 0..H1-1)
      [S_pad,    S_pad+H1)      W2  (cols 0..H2-1)
      [S_pad+H1, S_pad+H1+H2)   W3  (cols 0..A-1)
      [.., ..+8)                bias rows b1, b2, b3 (then zero rows)
    """
    w1, b1, w2, b2, w3, b3 = logical_params
    s, h1 = w1.shape
    h2 = w2.shape[1]
    a = w3.shape[1]
    assert max(h1, h2, a) <= LANE, "feature dims must fit one 128-lane pad"
    assert h1 % 8 == 0 and h2 % 8 == 0, "hidden sizes must be multiples of 8"

    s_pad = _round_up(s, 8)
    r = s_pad + h1 + h2 + 8

    p = jnp.zeros((r, LANE), jnp.float32)
    p = p.at[0:s, 0:h1].set(w1)
    p = p.at[s_pad:s_pad + h1, 0:h2].set(w2)
    p = p.at[s_pad + h1:s_pad + h1 + h2, 0:a].set(w3)
    r3 = s_pad + h1 + h2
    p = p.at[r3 + 0, 0:h1].set(b1[0])
    p = p.at[r3 + 1, 0:h2].set(b2[0])
    p = p.at[r3 + 2, 0:a].set(b3[0])

    dims = (s, s_pad, h1, h2, a)
    return p, dims


def _pick_tb(b):
    """Bounded batch tile: multiple of 8, capped at 256; split for multi-TC."""
    tb = min(_round_up(b, 8), 256)
    n_cores = getattr(jax.devices()[0], "num_cores", 1)  # v7x: 2 TCs per chip
    if n_cores > 1 and b >= 16:
        tb = min(tb, max(8, _round_up(pl.cdiv(b, n_cores), 8)))
    return tb


def actor_forward(state, packed_params, maxaction):
    """state: [B, S] -> padded actions slab [B_pad, 128] (float32).

    Real actions live in [:B, :action_dim]; slicing is left to the consumer
    so the tiny-batch path has no extra XLA op after the kernel.
    """
    p, (s, s_pad, h1, h2, _a) = packed_params
    b, s_in = state.shape
    assert s_in == s

    tb = _pick_tb(b)
    b_pad = _round_up(b, tb)
    grid = (b_pad // tb,)

    # Pad state rows/cols only when actually needed (no-op op avoidance at B=8).
    if b_pad != b or s_pad != s:
        state = jnp.pad(state, ((0, b_pad - b), (0, s_pad - s)))

    r = p.shape[0]
    cost = pl.CostEstimate(
        flops=2 * b_pad * LANE * (s_pad + h1 + h2),
        transcendentals=b_pad * LANE,
        bytes_accessed=4 * (b_pad * s_pad + r * LANE + b_pad * LANE),
    )

    out = pl.pallas_call(
        functools.partial(_actor_kernel, maxaction=float(maxaction),
                          s_pad=s_pad, h1=h1, h2=h2),
        out_shape=jax.ShapeDtypeStruct((b_pad, LANE), jnp.float32),
        grid=grid,
        in_specs=[
            pl.BlockSpec((tb, s_pad), lambda i: (i, 0)),   # state tile
            pl.BlockSpec((r, LANE), lambda i: (0, 0)),     # packed params
        ],
        out_specs=pl.BlockSpec((tb, LANE), lambda i: (i, 0)),
        compiler_params=pltpu.CompilerParams(
            dimension_semantics=("parallel",)),
        cost_estimate=cost,
    )(state, p)

    return out


def init_logical_params(key, state_dim, h1, h2, action_dim):
    """Deterministic synthetic parameters, stored transposed ([in, out])."""
    ks = jax.random.split(key, 6)
    w1 = jax.random.normal(ks[0], (state_dim, h1), jnp.float32) * 0.1
    b1 = jax.random.normal(ks[1], (1, h1), jnp.float32) * 0.1
    w2 = jax.random.normal(ks[2], (h1, h2), jnp.float32) * 0.1
    b2 = jax.random.normal(ks[3], (1, h2), jnp.float32) * 0.1
    w3 = jax.random.normal(ks[4], (h2, action_dim), jnp.float32) * 0.1
    b3 = jax.random.normal(ks[5], (1, action_dim), jnp.float32) * 0.1
    return (w1, b1, w2, b2, w3, b3)


def reference_forward(state, logical_params, maxaction):
    w1, b1, w2, b2, w3, b3 = logical_params
    h1 = jax.nn.relu(state @ w1 + b1)
    h2 = jax.nn.relu(h1 @ w2 + b2)
    return jnp.tanh(h2 @ w3 + b3) * maxaction


if __name__ == "__main__":
    # Config.hidden_sizes = (32, 32); small RL-style shapes.
    batch, state_dim, action_dim = 8, 16, 8
    hidden1, hidden2 = 32, 32
    maxaction = 2.0

    key = jax.random.PRNGKey(0)
    k_s, k_p = jax.random.split(key, 2)
    state = jax.random.normal(k_s, (batch, state_dim), jnp.float32)

    logical = init_logical_params(k_p, state_dim, hidden1, hidden2, action_dim)
    packed = pack_params(logical)

    out_slab = actor_forward(state, packed, maxaction)   # [B_pad, 128]
    jax.block_until_ready(out_slab)

    actions = out_slab[:batch, :action_dim]              # consumer-side slice
    ref = reference_forward(state, logical, maxaction)
    assert actions.shape == (batch, action_dim)
    assert jnp.allclose(actions, ref, atol=1e-4, rtol=1e-4), \
        "mismatch vs JAX reference"
    # Padded lanes must stay exactly 0 (tanh(0)*maxaction == 0).
    assert jnp.allclose(out_slab[:batch, action_dim:], 0.0), \
        "padded output lanes are not zero"

    print("KERNEL_OK")
</pallas_src>

<mosaic_0001>
module attributes {stable_mosaic.version = 11 : i64} {
  func.func @_actor_kernel(%arg0: i32, %arg1: memref<8x16xf32, #tpu.memory_space<vmem>>, %arg2: memref<88x128xf32, #tpu.memory_space<vmem>>, %arg3: memref<8x128xf32, #tpu.memory_space<vmem>>) attributes {dimension_semantics = [#tpu.dimension_semantics<parallel>], iteration_bounds = array<i64: 1>, scalar_prefetch = 0 : i64, scratch_operands = 0 : i64, tpu.core_type = #tpu.core_type<tc>, window_params = [{transform_indices = @transform_0, window_bounds = array<i64: 8, 16>}, {pipeline_mode = #tpu.pipeline_mode<synchronous>, transform_indices = @transform_1, window_bounds = array<i64: 88, 128>}, {transform_indices = @transform_2, window_bounds = array<i64: 8, 128>}]} {
    %c0 = arith.constant 0 : index
    %c0_0 = arith.constant 0 : index
    %0 = vector.load %arg2[%c0, %c0_0] : memref<88x128xf32, #tpu.memory_space<vmem>>, vector<16x128xf32>
    %c16 = arith.constant 16 : index
    %c0_1 = arith.constant 0 : index
    %1 = vector.load %arg2[%c16, %c0_1] : memref<88x128xf32, #tpu.memory_space<vmem>>, vector<32x128xf32>
    %c48 = arith.constant 48 : index
    %c0_2 = arith.constant 0 : index
    %2 = vector.load %arg2[%c48, %c0_2] : memref<88x128xf32, #tpu.memory_space<vmem>>, vector<32x128xf32>
    %c80 = arith.constant 80 : index
    %c0_3 = arith.constant 0 : index
    %3 = vector.load %arg2[%c80, %c0_3] : memref<88x128xf32, #tpu.memory_space<vmem>>, vector<8x128xf32>
    %4 = vector.extract_strided_slice %3 {offsets = [0, 0], sizes = [1, 128], strides = [1, 1]} : vector<8x128xf32> to vector<1x128xf32>
    %5 = vector.extract_strided_slice %3 {offsets = [1, 0], sizes = [1, 128], strides = [1, 1]} : vector<8x128xf32> to vector<1x128xf32>
    %6 = vector.extract_strided_slice %3 {offsets = [2, 0], sizes = [1, 128], strides = [1, 1]} : vector<8x128xf32> to vector<1x128xf32>
    %c0_4 = arith.constant 0 : index
    %c0_5 = arith.constant 0 : index
    %7 = vector.load %arg1[%c0_4, %c0_5] : memref<8x16xf32, #tpu.memory_space<vmem>>, vector<8x16xf32>
    %cst = arith.constant dense<0.000000e+00> : vector<8x128xf32>
    %8 = tpu.matmul %7, %0, %cst {dimension_numbers = #tpu.dot_dimension_numbers<[1], [0], [0], [1], [0, 0, 1, 1], [], []>} : vector<8x16xf32>, vector<16x128xf32>, vector<8x128xf32> -> vector<8x128xf32>
    %9 = vector.broadcast %4 : vector<1x128xf32> to vector<8x128xf32>
    %10 = arith.addf %8, %9 : vector<8x128xf32>
    %cst_6 = arith.constant 0.000000e+00 : f32
    %11 = vector.broadcast %cst_6 : f32 to vector<8x128xf32>
    %12 = arith.maximumf %10, %11 : vector<8x128xf32>
    %13 = vector.extract_strided_slice %12 {offsets = [0, 0], sizes = [8, 32], strides = [1, 1]} : vector<8x128xf32> to vector<8x32xf32>
    %cst_7 = arith.constant dense<0.000000e+00> : vector<8x128xf32>
    %14 = tpu.matmul %13, %1, %cst_7 {dimension_numbers = #tpu.dot_dimension_numbers<[1], [0], [0], [1], [0, 0, 1, 1], [], []>} : vector<8x32xf32>, vector<32x128xf32>, vector<8x128xf32> -> vector<8x128xf32>
    %15 = vector.broadcast %5 : vector<1x128xf32> to vector<8x128xf32>
    %16 = arith.addf %14, %15 : vector<8x128xf32>
    %cst_8 = arith.constant 0.000000e+00 : f32
    %17 = vector.broadcast %cst_8 : f32 to vector<8x128xf32>
    %18 = arith.maximumf %16, %17 : vector<8x128xf32>
    %19 = vector.extract_strided_slice %18 {offsets = [0, 0], sizes = [8, 32], strides = [1, 1]} : vector<8x128xf32> to vector<8x32xf32>
    %cst_9 = arith.constant dense<0.000000e+00> : vector<8x128xf32>
    %20 = tpu.matmul %19, %2, %cst_9 {dimension_numbers = #tpu.dot_dimension_numbers<[1], [0], [0], [1], [0, 0, 1, 1], [], []>} : vector<8x32xf32>, vector<32x128xf32>, vector<8x128xf32> -> vector<8x128xf32>
    %21 = vector.broadcast %6 : vector<1x128xf32> to vector<8x128xf32>
    %22 = arith.addf %20, %21 : vector<8x128xf32>
    %23 = math.tanh %22 : vector<8x128xf32>
    %cst_10 = arith.constant 2.000000e+00 : f32
    %24 = vector.broadcast %cst_10 : f32 to vector<8x128xf32>
    %25 = arith.mulf %23, %24 : vector<8x128xf32>
    %c0_11 = arith.constant 0 : index
    %c0_12 = arith.constant 0 : index
    %26 = vector.load %arg3[%c0_11, %c0_12] : memref<8x128xf32, #tpu.memory_space<vmem>>, vector<8x128xf32>
    tpu.vector_store %arg3[%c0_11, %c0_12], %25 {strides = array<i32>} : memref<8x128xf32, #tpu.memory_space<vmem>>, vector<8x128xf32>,
    return
  }
  func.func @transform_0(%arg0: i32) -> (i32, i32) {
    %c0_i32 = arith.constant 0 : i32
    %c0_i32_0 = arith.constant 0 : i32
    return %arg0, %c0_i32 : i32, i32
  }
  func.func @transform_1(%arg0: i32) -> (i32, i32) {
    %c0_i32 = arith.constant 0 : i32
    %c0_i32_0 = arith.constant 0 : i32
    %c0_i32_1 = arith.constant 0 : i32
    return %c0_i32, %c0_i32_0 : i32, i32
  }
  func.func @transform_2(%arg0: i32) -> (i32, i32) {
    %c0_i32 = arith.constant 0 : i32
    %c0_i32_0 = arith.constant 0 : i32
    return %arg0, %c0_i32 : i32, i32
  }
}

</mosaic_0001>

<bundles_post_ra>
// kernel: tpu_custom_call.1
= control target key start
LH: loop header
LB: loop body
LE: loop exit
PB: predicated region body
PF: predicated region fallthrough
CT: control target
= control target key end

     0   :  { %7 = vsyncpa [#allocation3], 0  ;;  %s460_s0 = inlined_call_operand.hbm [shape: f32[8,16], index: 0, kind: input, shape index: {}]   ;;  %s461_s1 = inlined_call_operand.hbm [shape: f32[88,128], index: 1, kind: input, shape index: {}]   ;;  %s462_s2 = inlined_call_operand.hbm [shape: f32[8,128], index: 2, kind: output, shape index: {}]  }
   0x1   :  { %8 = vsyncpa [#allocation6], 0 }
   0x2   :  { %9 = vsyncpa [#allocation4], 0  ;;  %s424_s9 = smov [#allocation2]   ;;  %s425_s11 = smov [#allocation5]  }
   0x3   :  { %s16_s10 = sshll.u32 %s424_s9, 4  ;;  %s25_s12 = sshll.u32 %s425_s11, 4  ;;  %s17_s10 = int_to_ptr.vmem [resolvable:$true] %s16_s10  ;;  %s26_s12 = int_to_ptr.vmem [resolvable:$true] %s25_s12 }
   0x4   :  { %s366_s13 = scalar_lea.vmem %s17_s10, 128  ;;  %p371_p1 = scmp.lt.s32.totalorder %s17_s10, %s17_s10 }
   0x5   :  { %p367_p0 = scmp.ne.s32.totalorder %s17_s10, %s366_s13  ;;  %p372_p2 = scmp.lt.s32.totalorder %s366_s13, %s366_s13 }
   0x7   :  { %p373_p3 = por %p372_p2, %p371_p1 }
   0x9   :  { %p374_p4 = pnand %p373_p3, %p367_p0 }
   0xb   :  { %377 = shalt.err (!%p374_p4)
}
   0xc   :  { %19 = dma.hbm_to_vmem [thread:$0]  %s460_s0, 128, %s17_s10, [#allocation3]  }
   0xd   :  { %s386_s16 = scalar_lea.vmem %s26_s12, 1408  ;;  %p391_p6 = scmp.lt.s32.totalorder %s26_s12, %s26_s12 }
   0xe   :  { %p387_p5 = scmp.ne.s32.totalorder %s26_s12, %s386_s16  ;;  %p392_p7 = scmp.lt.s32.totalorder %s386_s16, %s386_s16 }
  0x10   :  { %p393_p8 = por %p392_p7, %p391_p6 }
  0x12   :  { %p394_p9 = pnand %p393_p8, %p387_p5 }
  0x14   :  { %397 = shalt.err (!%p394_p9)
}
  0x15   :  { %s426_s17 = smov 128   ;;  %s427_s18 = smov 8  }
  0x16   :  { %31 = dma.hbm_to_vmem [thread:$0]  %s461_s1, 1408, %s26_s12, [#allocation6], %s426_s17, %s426_s17, %s427_s18  }
  0x17   :  { %418 = dma.done.wait [#allocation3], 128  }
  0x18   :  { %419 = vsyncadd [#allocation3], 4294967168 }
  0x19   :  { %420 = dma.done.wait [#allocation6], 1408  }
  0x1a   :  { %421 = vsyncadd [#allocation6], 4294965888  ;;  %v428_v0 = vmov 0.0   ;;  %vm429_vm0 = vmmov 0   ;;  %v39_v1 = vld [vmem:[#allocation5 + $0x8] sm:$0xff]  ;;  %v38_v2 = vld [vmem:[#allocation5] sm:$0xff]  ;;  %v50_v9 = vlaneseq }
  0x1b   :  { %320 = vmatprep.subr.mxu0 %v428_v0  ;;  %324 = vmatprep.mubr.msk.f32.mxu0 %vm429_vm0, %v428_v0  ;;  %v49_v3 = vld [vmem:[#allocation2] sm:$0xff]  ;;  %vm54_vm1 = vcmask 130048   ;;  %v43_v4 = vld [vmem:[#allocation5 + $0x28] sm:$0xff]  ;;  %v42_v5 = vld [vmem:[#allocation5 + $0x20] sm:$0xff]  ;;  %vm133_vm2 = vcmask 261120   ;;  %s430_s0 = smov [#allocation7]  }
  0x1c   :  { %327 = vmatprep.subr.mxu1 %v428_v0  ;;  %335 = vmatprep.mubr.msk.f32.mxu1 %vm429_vm0, %v428_v0  ;;  %v41_v6 = vld [vmem:[#allocation5 + $0x18] sm:$0xff]  ;;  %v40_v7 = vld [vmem:[#allocation5 + $0x10] sm:$0xff]  ;;  %v47_v8 = vld [vmem:[#allocation5 + $0x48] sm:$0xff]  ;;  %v51_v10 = vshrl.u32 %v50_v9, 7  ;;  %s294_s1 = sshll.u32 %s430_s0, 4  ;;  %s295_s1 = int_to_ptr.vmem [resolvable:$true] %s294_s1 }
  0x1d   :  { %321 = vmatpush3.msra.mxu0 %v39_v1  ;;  %328 = vmatpush3.msra.mxu1 %v43_v4  ;;  %v48_v12 = vld [vmem:[#allocation5 + $0x50] sm:$0xff]  ;;  %v46_v18 = vld [vmem:[#allocation5 + $0x40] sm:$0xff]  ;;  %v45_v19 = vld [vmem:[#allocation5 + $0x38] sm:$0xff]  ;;  %s398_s21 = scalar_lea.vmem %s295_s1, 128  ;;  %p403_p11 = scmp.lt.s32.totalorder %s295_s1, %s295_s1 }
  0x1e   :  { %322 = vmatprep.subr.mxu0 %v428_v0  ;;  %329 = vmatprep.subr.mxu1 %v428_v0  ;;  %v52_v11 = vsub.s32 0, %v51_v10  ;;  %v44_v20 = vld [vmem:[#allocation5 + $0x30] sm:$0xff]  ;;  %v131_v21 = vsub.s32 1, %v51_v10  ;;  %v210_v27 = vsub.s32 2, %v51_v10  ;;  %p399_p10 = scmp.ne.s32.totalorder %s295_s1, %s398_s21  ;;  %p404_p12 = scmp.lt.s32.totalorder %s398_s21, %s398_s21 }
  0x1f   :  { %323 = vmatpush3.msra.mxu0 %v38_v2  ;;  %330 = vmatpush3.msra.mxu1 %v42_v5 }
  0x20   :  { %325 = vmatmul.mubr.msk.f32.vlgmr.msra.gmra.mxu0 %vm54_vm1, %v49_v3  ;;  %338 = vmatprep.subr.mxu0 %v428_v0  ;;  %v53_v13 = vrot.slane %v48_v12, %v52_v11  ;;  %v132_v22 = vrot.slane %v48_v12, %v131_v21  ;;  %v211_v28 = vrot.slane %v48_v12, %v210_v27  ;;  %p405_p13 = por %p404_p12, %p403_p11 }
  0x21   :  { %346 = vmatprep.mubr.msk.f32.mxu0 %vm429_vm0, %v428_v0  ;;  %331 = vmatprep.subr.mxu1 %v428_v0 }
  0x22   :  { %332 = vmatpush3.msra.mxu1 %v41_v6  ;;  %339 = vmatpush3.msra.mxu0 %v47_v8  ;;  %p406_p0 = pnand %p405_p13, %p399_p10 }
  0x23   :  { %333 = vmatprep.subr.mxu1 %v428_v0  ;;  %340 = vmatprep.subr.mxu0 %v428_v0 }
  0x24   :  { %334 = vmatpush3.msra.mxu1 %v40_v7  ;;  %341 = vmatpush3.msra.mxu0 %v46_v18 }
  0x25   :  { %342 = vmatprep.subr.mxu0 %v428_v0 }
  0x26   :  { %343 = vmatpush3.msra.mxu0 %v45_v19 }
  0x27   :  { %344 = vmatprep.subr.mxu0 %v428_v0 }
  0x28   :  { %345 = vmatpush3.msra.mxu0 %v44_v20 }
  0xe0   :  { %v124_v14 = vpop.f32.mrf.mxu0 }
  0xe1   :  { %v125_v15 = vadd.f32 %v124_v14, %v53_v13 }
  0xe2   :  { %v326_v16 = vpop.f32.mrf.mxu0 }
  0xe3   :  { %v128_v17 = vmax.f32 %v125_v15, 0.0 }
  0xe5   :  { %336 = vmatmul.mubr.msk.f32.vlgmr.msra.gmra.mxu1 %vm133_vm2, %v128_v17 }
 0x1a5   :  { %v203_v23 = vpop.f32.mrf.mxu1 }
 0x1a6   :  { %v204_v24 = vadd.f32 %v203_v23, %v132_v22 }
 0x1a7   :  { %v337_v25 = vpop.f32.mrf.mxu1 }
 0x1a8   :  { %v207_v26 = vmax.f32 %v204_v24, 0.0 }
 0x1aa   :  { %347 = vmatmul.mubr.msk.f32.vlgmr.msra.gmra.mxu0 %vm133_vm2, %v207_v26 }
 0x26a   :  { %v281_v29 = vpop.f32.mrf.mxu0 }
 0x26b   :  { %v282_v30 = vadd.f32 %v281_v29, %v211_v28 }
 0x26c   :  { %v348_v31 = vpop.f32.mrf.mxu0 }
 0x26d   :  { %356 = vtanh.f32 %v282_v30 }
 0x27a   :  { %v357_v32 = vpop.eup %356 }
 0x27b   :  { %v286_v33 = vmul.f32 2.0, %v357_v32 }
 0x27d   :  { %287 = vst [vmem:[#allocation7] sm:$0xff] %v286_v33 }
 0x27e   :  { %409 = shalt.err (!%p406_p0)
}
 0x27f   :  { %297 = dma.vmem_to_hbm [thread:$0]  %s295_s1, 128, %s462_s2, [#allocation4]  }
 0x280   :  { %422 = dma.done.wait [#allocation4], 128  }
 0x281   :  { %423 = vsyncadd [#allocation4], 4294967168 }
 0x282   :  { %301 = vsyncpa [#allocation3], 1 }
 0x283   :  { %302 = vsyncpa [#allocation6], 1 }
 0x284   :  { %303 = vsyncpa [#allocation4], 1 }

</bundles_post_ra>
